<compile_context>
chip_gen: v5e
topology: v5e:2x2
jax: 0.10.0
libtpu: 0.0.40
codegen_flags: <defaults>
</compile_context>

<pallas_src>
import functools
import math

import jax
import jax.numpy as jnp
from jax import lax
from jax.experimental import pallas as pl
from jax.experimental.pallas import tpu as pltpu

# ----------------------------- config ---------------------------------------
LATENT_DIM = 6
LAYER_DIMS = [32, 16]          # analog of [256, 128], scaled small
INPUT_DIM = 32                 # must equal LAYER_DIMS[0] for forward to work
BATCH = 64                     # small demo batch (exercises a 2-step grid)

LANE = 128
SUBLANE = 8
MAX_TB = 256                   # max batch-tile rows (fills MXU M dimension)
NUM_LAYERS = 4                 # 3 net linears + output_layer


def _round_up(n, m):
    return ((n + m - 1) // m) * m


def _pad_to(x, rows, cols):
    r, c = x.shape
    return jnp.pad(x, ((0, rows - r), (0, cols - c)))


def _gelu_exact(x):
    # PyTorch nn.GELU() default: 0.5*x*(1+erf(x/sqrt(2)))
    return 0.5 * x * (1.0 + lax.erf(x * (1.0 / math.sqrt(2.0))))


# ----------------------------- kernel ----------------------------------------
def decoder_kernel(x_ref, w_ref, b_ref, o_ref):
    """Fused MLP: 3x (matmul + bias + GELU) + final matmul + bias.

    x_ref: (tb, 128) activations.
    w_ref: (4, 128, 128) packed weights (layer i at w_ref[i]).
    b_ref: (8, 128) f32 tile whose rows 0..3 hold b1..b4.
    """
    cdt = w_ref.dtype                        # MXU input/storage dtype
    biases = b_ref[...]                      # (8, 128) f32

    def linear(h, i):
        acc = jnp.dot(h, w_ref[i], preferred_element_type=jnp.float32)
        return acc + biases[i:i + 1, :]      # static sublane slice, broadcast add

    h = x_ref[...]
    h = _gelu_exact(linear(h, 0)).astype(cdt)
    h = _gelu_exact(linear(h, 1)).astype(cdt)
    h = _gelu_exact(linear(h, 2)).astype(cdt)
    o_ref[...] = linear(h, 3).astype(o_ref.dtype)


# ----------------------------- param packing ---------------------------------
def prepare_decoder_params(params, param_dtype=jnp.float32):
    """One-time packing (call OUTSIDE the hot path).

    params: list of 4 (W [in,out], b [out]) f32 pairs.
    Returns (wpack, bpack):
      wpack = (4, 128, 128) weights zero-padded, in `param_dtype`
      bpack = (8, 128) f32 tile with b1..b4 in rows 0..3.
    Use param_dtype=jnp.bfloat16 on v6e/v7x for higher MXU throughput
    (numerics then differ slightly from the f32 PyTorch reference).
    """
    assert len(params) == NUM_LAYERS
    wpack = jnp.stack(
        [_pad_to(W.astype(param_dtype), LANE, LANE) for W, _ in params])
    bpack = jnp.zeros((SUBLANE, LANE), jnp.float32)
    for i, (_, b) in enumerate(params):
        bpack = bpack.at[i, : b.shape[0]].set(b.astype(jnp.float32))
    return wpack, bpack


def _choose_batch_tile(B):
    """Pick (tb, Bp): big tiles for MXU fill, >=2 grid steps when possible."""
    Bp = _round_up(max(B, SUBLANE), SUBLANE)
    if Bp <= SUBLANE:
        return SUBLANE, SUBLANE
    if Bp >= 2 * MAX_TB:
        return MAX_TB, _round_up(Bp, MAX_TB)
    # Two tiles so a 2-TC chip (v7x) can shard the "parallel" grid axis.
    tb = _round_up((Bp + 1) // 2, SUBLANE)
    return tb, _round_up(Bp, tb)


# ----------------------------- wrapper ----------------------------------------
@functools.partial(jax.jit, static_argnames=("out_dim",))
def decoder_forward(x, wpack, bpack, out_dim):
    """x: [B, latent_dim] f32; wpack/bpack from prepare_decoder_params."""
    B, _ = x.shape
    tb, Bp = _choose_batch_tile(B)
    cdt = wpack.dtype
    itemsize = jnp.dtype(cdt).itemsize

    # Only x is padded per call (single pad op); params are pre-packed.
    xp = _pad_to(x.astype(cdt), Bp, LANE)

    cost = pl.CostEstimate(
        flops=2 * Bp * LANE * LANE * NUM_LAYERS,
        transcendentals=3 * Bp * LANE,
        bytes_accessed=(Bp * LANE * itemsize                       # x in
                        + NUM_LAYERS * LANE * LANE * itemsize      # weights
                        + SUBLANE * LANE * 4                       # biases
                        + Bp * LANE * 4),                          # out
    )

    out_p = pl.pallas_call(
        decoder_kernel,
        out_shape=jax.ShapeDtypeStruct((Bp, LANE), jnp.float32),
        grid_spec=pltpu.PrefetchScalarGridSpec(
            num_scalar_prefetch=0,
            grid=(Bp // tb,),
            in_specs=[
                pl.BlockSpec((tb, LANE), lambda i: (i, 0)),
                pl.BlockSpec((NUM_LAYERS, LANE, LANE), lambda i: (0, 0, 0)),
                pl.BlockSpec((SUBLANE, LANE), lambda i: (0, 0)),
            ],
            out_specs=pl.BlockSpec((tb, LANE), lambda i: (i, 0)),
        ),
        compiler_params=pltpu.CompilerParams(
            dimension_semantics=("parallel",)),
        cost_estimate=cost,
    )(xp, wpack, bpack)

    return out_p[:B, :out_dim]


# ----------------------------- param init ------------------------------------
def init_params(key):
    """Deterministic init mirroring nn.Linear shapes (uniform +-1/sqrt(fan_in))."""
    dims = [LATENT_DIM] + LAYER_DIMS[::-1] + [INPUT_DIM]   # 6 -> 16 -> 32 -> 32
    layer_io = list(zip(dims[:-1], dims[1:]))              # net layers
    layer_io.append((LAYER_DIMS[0], INPUT_DIM))            # output_layer: 32 -> 32

    params = []
    for (din, dout) in layer_io:
        key, kw, kb = jax.random.split(key, 3)
        bound = 1.0 / math.sqrt(din)
        W = jax.random.uniform(kw, (din, dout), jnp.float32, -bound, bound)
        b = jax.random.uniform(kb, (dout,), jnp.float32, -bound, bound)
        params.append((W, b))
    return params


def decoder_reference(x, params):
    h = x
    for (W, b) in params[:-1]:
        h = jax.nn.gelu(h @ W + b, approximate=False)
    W, b = params[-1]
    return h @ W + b


# ----------------------------- main -------------------------------------------
if __name__ == "__main__":
    key = jax.random.PRNGKey(0)
    k_x, k_p = jax.random.split(key)

    x = jax.random.normal(k_x, (BATCH, LATENT_DIM), jnp.float32)
    params = init_params(k_p)

    # One-time parameter packing (hoisted out of the forward hot path).
    wpack, bpack = prepare_decoder_params(params, param_dtype=jnp.float32)

    out = decoder_forward(x, wpack, bpack, INPUT_DIM)
    out = jax.block_until_ready(out)

    ref = decoder_reference(x, params)
    assert out.shape == (BATCH, INPUT_DIM), out.shape
    assert jnp.allclose(out, ref, atol=1e-5, rtol=1e-5), \
        float(jnp.max(jnp.abs(out - ref)))

    print("KERNEL_OK")
</pallas_src>

<mosaic_0001>
module attributes {stable_mosaic.version = 11 : i64} {
  func.func @decoder_kernel(%arg0: i32, %arg1: memref<32x128xf32, #tpu.memory_space<vmem>>, %arg2: memref<4x128x128xf32, #tpu.memory_space<vmem>>, %arg3: memref<8x128xf32, #tpu.memory_space<vmem>>, %arg4: memref<32x128xf32, #tpu.memory_space<vmem>>) attributes {dimension_semantics = [#tpu.dimension_semantics<parallel>], iteration_bounds = array<i64: 2>, scalar_prefetch = 0 : i64, scratch_operands = 0 : i64, tpu.core_type = #tpu.core_type<tc>, window_params = [{transform_indices = @transform_0, window_bounds = array<i64: 32, 128>}, {pipeline_mode = #tpu.pipeline_mode<synchronous>, transform_indices = @transform_1, window_bounds = array<i64: 4, 128, 128>}, {pipeline_mode = #tpu.pipeline_mode<synchronous>, transform_indices = @transform_2, window_bounds = array<i64: 8, 128>}, {transform_indices = @transform_3, window_bounds = array<i64: 32, 128>}]} {
    %c0 = arith.constant 0 : index
    %c0_0 = arith.constant 0 : index
    %0 = vector.load %arg3[%c0, %c0_0] : memref<8x128xf32, #tpu.memory_space<vmem>>, vector<8x128xf32>
    %c0_1 = arith.constant 0 : index
    %c0_2 = arith.constant 0 : index
    %1 = vector.load %arg1[%c0_1, %c0_2] : memref<32x128xf32, #tpu.memory_space<vmem>>, vector<32x128xf32>
    %c0_3 = arith.constant 0 : index
    %c0_4 = arith.constant 0 : index
    %c0_5 = arith.constant 0 : index
    %2 = vector.load %arg2[%c0_3, %c0_4, %c0_5] : memref<4x128x128xf32, #tpu.memory_space<vmem>>, vector<1x128x128xf32>
    %3 = vector.shape_cast %2 : vector<1x128x128xf32> to vector<128x128xf32>
    %cst = arith.constant dense<0.000000e+00> : vector<32x128xf32>
    %4 = tpu.matmul %1, %3, %cst {dimension_numbers = #tpu.dot_dimension_numbers<[1], [0], [0], [1], [0, 0, 1, 1], [], []>} : vector<32x128xf32>, vector<128x128xf32>, vector<32x128xf32> -> vector<32x128xf32>
    %5 = vector.extract_strided_slice %0 {offsets = [0, 0], sizes = [1, 128], strides = [1, 1]} : vector<8x128xf32> to vector<1x128xf32>
    %6 = vector.broadcast %5 : vector<1x128xf32> to vector<32x128xf32>
    %7 = arith.addf %4, %6 : vector<32x128xf32>
    %cst_6 = arith.constant 5.000000e-01 : f32
    %8 = vector.broadcast %cst_6 : f32 to vector<32x128xf32>
    %9 = arith.mulf %8, %7 : vector<32x128xf32>
    %cst_7 = arith.constant 0.707106769 : f32
    %10 = vector.broadcast %cst_7 : f32 to vector<32x128xf32>
    %11 = arith.mulf %7, %10 : vector<32x128xf32>
    %12 = math.erf %11 : vector<32x128xf32>
    %cst_8 = arith.constant 1.000000e+00 : f32
    %13 = vector.broadcast %cst_8 : f32 to vector<32x128xf32>
    %14 = arith.addf %13, %12 : vector<32x128xf32>
    %15 = arith.mulf %9, %14 : vector<32x128xf32>
    %c1 = arith.constant 1 : index
    %c0_9 = arith.constant 0 : index
    %c0_10 = arith.constant 0 : index
    %16 = vector.load %arg2[%c1, %c0_9, %c0_10] : memref<4x128x128xf32, #tpu.memory_space<vmem>>, vector<1x128x128xf32>
    %17 = vector.shape_cast %16 : vector<1x128x128xf32> to vector<128x128xf32>
    %cst_11 = arith.constant dense<0.000000e+00> : vector<32x128xf32>
    %18 = tpu.matmul %15, %17, %cst_11 {dimension_numbers = #tpu.dot_dimension_numbers<[1], [0], [0], [1], [0, 0, 1, 1], [], []>} : vector<32x128xf32>, vector<128x128xf32>, vector<32x128xf32> -> vector<32x128xf32>
    %19 = vector.extract_strided_slice %0 {offsets = [1, 0], sizes = [1, 128], strides = [1, 1]} : vector<8x128xf32> to vector<1x128xf32>
    %20 = vector.broadcast %19 : vector<1x128xf32> to vector<32x128xf32>
    %21 = arith.addf %18, %20 : vector<32x128xf32>
    %cst_12 = arith.constant 5.000000e-01 : f32
    %22 = vector.broadcast %cst_12 : f32 to vector<32x128xf32>
    %23 = arith.mulf %22, %21 : vector<32x128xf32>
    %cst_13 = arith.constant 0.707106769 : f32
    %24 = vector.broadcast %cst_13 : f32 to vector<32x128xf32>
    %25 = arith.mulf %21, %24 : vector<32x128xf32>
    %26 = math.erf %25 : vector<32x128xf32>
    %cst_14 = arith.constant 1.000000e+00 : f32
    %27 = vector.broadcast %cst_14 : f32 to vector<32x128xf32>
    %28 = arith.addf %27, %26 : vector<32x128xf32>
    %29 = arith.mulf %23, %28 : vector<32x128xf32>
    %c2 = arith.constant 2 : index
    %c0_15 = arith.constant 0 : index
    %c0_16 = arith.constant 0 : index
    %30 = vector.load %arg2[%c2, %c0_15, %c0_16] : memref<4x128x128xf32, #tpu.memory_space<vmem>>, vector<1x128x128xf32>
    %31 = vector.shape_cast %30 : vector<1x128x128xf32> to vector<128x128xf32>
    %cst_17 = arith.constant dense<0.000000e+00> : vector<32x128xf32>
    %32 = tpu.matmul %29, %31, %cst_17 {dimension_numbers = #tpu.dot_dimension_numbers<[1], [0], [0], [1], [0, 0, 1, 1], [], []>} : vector<32x128xf32>, vector<128x128xf32>, vector<32x128xf32> -> vector<32x128xf32>
    %33 = vector.extract_strided_slice %0 {offsets = [2, 0], sizes = [1, 128], strides = [1, 1]} : vector<8x128xf32> to vector<1x128xf32>
    %34 = vector.broadcast %33 : vector<1x128xf32> to vector<32x128xf32>
    %35 = arith.addf %32, %34 : vector<32x128xf32>
    %cst_18 = arith.constant 5.000000e-01 : f32
    %36 = vector.broadcast %cst_18 : f32 to vector<32x128xf32>
    %37 = arith.mulf %36, %35 : vector<32x128xf32>
    %cst_19 = arith.constant 0.707106769 : f32
    %38 = vector.broadcast %cst_19 : f32 to vector<32x128xf32>
    %39 = arith.mulf %35, %38 : vector<32x128xf32>
    %40 = math.erf %39 : vector<32x128xf32>
    %cst_20 = arith.constant 1.000000e+00 : f32
    %41 = vector.broadcast %cst_20 : f32 to vector<32x128xf32>
    %42 = arith.addf %41, %40 : vector<32x128xf32>
    %43 = arith.mulf %37, %42 : vector<32x128xf32>
    %c3 = arith.constant 3 : index
    %c0_21 = arith.constant 0 : index
    %c0_22 = arith.constant 0 : index
    %44 = vector.load %arg2[%c3, %c0_21, %c0_22] : memref<4x128x128xf32, #tpu.memory_space<vmem>>, vector<1x128x128xf32>
    %45 = vector.shape_cast %44 : vector<1x128x128xf32> to vector<128x128xf32>
    %cst_23 = arith.constant dense<0.000000e+00> : vector<32x128xf32>
    %46 = tpu.matmul %43, %45, %cst_23 {dimension_numbers = #tpu.dot_dimension_numbers<[1], [0], [0], [1], [0, 0, 1, 1], [], []>} : vector<32x128xf32>, vector<128x128xf32>, vector<32x128xf32> -> vector<32x128xf32>
    %47 = vector.extract_strided_slice %0 {offsets = [3, 0], sizes = [1, 128], strides = [1, 1]} : vector<8x128xf32> to vector<1x128xf32>
    %48 = vector.broadcast %47 : vector<1x128xf32> to vector<32x128xf32>
    %49 = arith.addf %46, %48 : vector<32x128xf32>
    %c0_24 = arith.constant 0 : index
    %c0_25 = arith.constant 0 : index
    %50 = vector.load %arg4[%c0_24, %c0_25] : memref<32x128xf32, #tpu.memory_space<vmem>>, vector<32x128xf32>
    tpu.vector_store %arg4[%c0_24, %c0_25], %49 {strides = array<i32>} : memref<32x128xf32, #tpu.memory_space<vmem>>, vector<32x128xf32>,
    return
  }
  func.func @transform_0(%arg0: i32) -> (i32, i32) {
    %c0_i32 = arith.constant 0 : i32
    %c0_i32_0 = arith.constant 0 : i32
    return %arg0, %c0_i32 : i32, i32
  }
  func.func @transform_1(%arg0: i32) -> (i32, i32, i32) {
    %c0_i32 = arith.constant 0 : i32
    %c0_i32_0 = arith.constant 0 : i32
    %c0_i32_1 = arith.constant 0 : i32
    %c0_i32_2 = arith.constant 0 : i32
    return %c0_i32, %c0_i32_0, %c0_i32_1 : i32, i32, i32
  }
  func.func @transform_2(%arg0: i32) -> (i32, i32) {
    %c0_i32 = arith.constant 0 : i32
    %c0_i32_0 = arith.constant 0 : i32
    %c0_i32_1 = arith.constant 0 : i32
    return %c0_i32, %c0_i32_0 : i32, i32
  }
  func.func @transform_3(%arg0: i32) -> (i32, i32) {
    %c0_i32 = arith.constant 0 : i32
    %c0_i32_0 = arith.constant 0 : i32
    return %arg0, %c0_i32 : i32, i32
  }
}

</mosaic_0001>

<bundles_post_ra>
// kernel: decoder_forward.1
= control target key start
LH: loop header
LB: loop body
LE: loop exit
PB: predicated region body
PF: predicated region fallthrough
CT: control target
= control target key end

     0   :  { %8 = vsyncpa [#allocation3], 0  ;;  %s1119_s12 = smov 0   ;;  %s1431_s0 = inlined_call_operand.vmem [shape: f32[64,128], index: 0, kind: input, shape index: {}]   ;;  %s1432_s1 = inlined_call_operand.hbm [shape: f32[4,128,128], index: 1, kind: input, shape index: {}]   ;;  %s1433_s2 = inlined_call_operand.vmem [shape: f32[8,128], index: 2, kind: input, shape index: {}]   ;;  %s1434_s3 = inlined_call_operand.vmem [shape: f32[64,128], index: 3, kind: output, shape index: {}]  }
   0x1 LB: > { %s124_s15 = sshll.u32 %s1432_s1, 4  ;;  %s983_s16 = sadd.s32 4294967295, %s1094_s12   ;;  %s1094_s12 = sphi %s1119_s12, %s14_s12   ;;  %s125_s15 = int_to_ptr.hbm [resolvable:$true] %s124_s15 }
   0x2   : > { %p985_p0 = scmp.ge.s32.totalorder %s1094_s12, 1  ;;  %p113_p1 = scmp.lt.s32.totalorder %s1094_s12, 3 }
   0x3   : > { %p1016_p2 = scmp.eq.s32.totalorder %s983_s16, 0  ;;  %s1096_s17 = smov [#allocation2]  }
   0x4   : > { %p114_p3 = pnand %p985_p0, %p113_p1  ;;  %s126_s18 = sshll.u32 %s1096_s17, 4  ;;  %s127_s18 = int_to_ptr.vmem [resolvable:$true] %s126_s18 }
   0x5   : > { %s1097_s19 = smov 128   ;;  %s1098_s20 = smov 8  }
   0x6   : > { %p1012_p4 = pneg %p114_p3  ;;  %154 = sbr.rel (%p114_p3) target bundleno = 750 (0x2ee), region = 32 }
   0x8   : > { %p1013_p5 = pnand %p1016_p2, %p1012_p4 }
   0xa   : > { %1015 = dma.hbm_to_vmem [thread:$0]  (!%p1013_p5), %s125_s15, 8192, %s127_s18, [#allocation3], %s1097_s19, %s1097_s19, %s1098_s20  }
   0xb   : > { %1089 = dma.done.wait (%p1016_p2), [#allocation3], 8192  }
   0xc   : > { %1091 = vsyncadd (%p1016_p2), [#allocation3], 4294959104  ;;  %v211_v0 = vld [vmem:[#allocation2 + $0x78] sm:$0xff]  ;;  %v210_v1 = vld [vmem:[#allocation2 + $0x70] sm:$0xff]  ;;  %s990_s21 = sshll.u32 %s983_s16, 2 }
   0xd   : > { %213 = vmatpush.msra.mxu0 %v211_v0  ;;  %v209_v2 = vld [vmem:[#allocation2 + $0x68] sm:$0xff]  ;;  %v208_v3 = vld [vmem:[#allocation2 + $0x60] sm:$0xff]  ;;  %v207_v4 = vld [vmem:[#allocation2 + $0x58] sm:$0xff]  ;;  %p180_p6 = scmp.lt.s32.totalorder %s990_s21, 7 }
   0xe   : > { %v206_v5 = vld [vmem:[#allocation2 + $0x50] sm:$0xff]  ;;  %v205_v6 = vld [vmem:[#allocation2 + $0x48] sm:$0xff]  ;;  %v204_v7 = vld [vmem:[#allocation2 + $0x40] sm:$0xff] }
   0xf   : > { %214 = vmatpush.msra.mxu0 %v210_v1  ;;  %v203_v8 = vld [vmem:[#allocation2 + $0x38] sm:$0xff]  ;;  %v202_v9 = vld [vmem:[#allocation2 + $0x30] sm:$0xff]  ;;  %v201_v10 = vld [vmem:[#allocation2 + $0x28] sm:$0xff]  ;;  %s1436_s21 = smov (!%p180_p6, %s990_s21), 7 }
  0x10   : > { %v200_v11 = vld [vmem:[#allocation2 + $0x20] sm:$0xff]  ;;  %v199_v12 = vld [vmem:[#allocation2 + $0x18] sm:$0xff]  ;;  %s991_s22 = sshll.u32 %s1436_s21, 3  ;;  %v198_v13 = vld [vmem:[#allocation2 + $0x10] sm:$0xff] }
  0x11   : > { %215 = vmatpush.msra.mxu0 %v209_v2  ;;  %v197_v14 = vld [vmem:[#allocation2 + $0x8] sm:$0xff]  ;;  %s183_s25 = scalar_lea.vmem %s1431_s0, %s991_s22  ;;  %v196_v15 = vld [vmem:[#allocation2] sm:$0xff]  ;;  %v434_v20 = vld [vmem:[#allocation2 + $0xf8] sm:$0xff]  ;;  %s189_s5 = scalar_lea.vmem %s1434_s3, %s991_s22 }
  0x12   : > { %v192_v16 = vld [vmem:[%s183_s25] sm:$0xff]  ;;  %v193_v17 = vld [vmem:[%s183_s25 + $0x8] sm:$0xff]  ;;  %v194_v18 = vld [vmem:[%s183_s25 + $0x10] sm:$0xff]  ;;  %436 = vmatpush.msra.mxu1 %v434_v20 }
  0x13   : > { %216 = vmatpush.msra.mxu0 %v208_v3  ;;  %v195_v19 = vld [vmem:[%s183_s25 + $0x18] sm:$0xff]  ;;  %v433_v21 = vld [vmem:[#allocation2 + $0xf0] sm:$0xff]  ;;  %v1145_v22 = vld [vmem:[%s1433_s2] sm:$0xff] }
  0x14   : > { %437 = vmatpush.msra.mxu1 %v433_v21  ;;  %v432_v23 = vld [vmem:[#allocation2 + $0xe8] sm:$0xff]  ;;  %v1148_v24 = vperm.slane %v1145_v22, 0  ;;  %v431_v25 = vld [vmem:[#allocation2 + $0xe0] sm:$0xff]  ;;  %v430_v26 = vld [vmem:[#allocation2 + $0xd8] sm:$0xff] }
  0x15   : > { %217 = vmatpush.msra.mxu0 %v207_v4  ;;  %v429_v29 = vld [vmem:[#allocation2 + $0xd0] sm:$0xff]  ;;  %v428_v31 = vld [vmem:[#allocation2 + $0xc8] sm:$0xff]  ;;  %v427_v33 = vld [vmem:[#allocation2 + $0xc0] sm:$0xff] }
  0x16   : > { %438 = vmatpush.msra.mxu1 %v432_v23  ;;  %v426_v35 = vld [vmem:[#allocation2 + $0xb8] sm:$0xff]  ;;  %v425_v39 = vld [vmem:[#allocation2 + $0xb0] sm:$0xff]  ;;  %v424_v43 = vld [vmem:[#allocation2 + $0xa8] sm:$0xff] }
  0x17   : > { %218 = vmatpush.msra.mxu0 %v206_v5  ;;  %v423_v47 = vld [vmem:[#allocation2 + $0xa0] sm:$0xff]  ;;  %v422_v51 = vld [vmem:[#allocation2 + $0x98] sm:$0xff]  ;;  %v421_v56 = vld [vmem:[#allocation2 + $0x90] sm:$0xff] }
  0x18   : > { %439 = vmatpush.msra.mxu1 %v431_v25  ;;  %v420_v61 = vld [vmem:[#allocation2 + $0x88] sm:$0xff]  ;;  %v419_v2 = vld [vmem:[#allocation2 + $0x80] sm:$0xff] }
  0x19   : > { %219 = vmatpush.msra.mxu0 %v205_v6 }
  0x1a   : > { %440 = vmatpush.msra.mxu1 %v430_v26 }
  0x1b   : > { %220 = vmatpush.msra.mxu0 %v204_v7 }
  0x1c   : > { %441 = vmatpush.msra.mxu1 %v429_v29 }
  0x1d   : > { %221 = vmatpush.msra.mxu0 %v203_v8 }
  0x1e   : > { %442 = vmatpush.msra.mxu1 %v428_v31 }
  0x1f   : > { %222 = vmatpush.msra.mxu0 %v202_v9 }
  0x20   : > { %443 = vmatpush.msra.mxu1 %v427_v33 }
  0x21   : > { %223 = vmatpush.msra.mxu0 %v201_v10 }
  0x22   : > { %444 = vmatpush.msra.mxu1 %v426_v35 }
  0x23   : > { %224 = vmatpush.msra.mxu0 %v200_v11 }
  0x24   : > { %445 = vmatpush.msra.mxu1 %v425_v39 }
  0x25   : > { %225 = vmatpush.msra.mxu0 %v199_v12 }
  0x26   : > { %446 = vmatpush.msra.mxu1 %v424_v43 }
  0x27   : > { %226 = vmatpush.msra.mxu0 %v198_v13 }
  0x28   : > { %447 = vmatpush.msra.mxu1 %v423_v47 }
  0x29   : > { %227 = vmatpush.msra.mxu0 %v197_v14 }
  0x2a   : > { %448 = vmatpush.msra.mxu1 %v422_v51 }
  0x2b   : > { %228 = vmatpush.msra.mxu0 %v196_v15 }
  0x2c   : > { %229 = vmatmul.f32.vlgmr.msra.gmra.mxu0 %v192_v16  ;;  %449 = vmatpush.msra.mxu1 %v421_v56 }
  0x2e   : > { %450 = vmatpush.msra.mxu1 %v420_v61 }
  0x30   : > { %451 = vmatpush.msra.mxu1 %v419_v2 }
  0x34   : > { %232 = vmatmul.f32.gmra.mxu0 %v193_v17 }
  0x3c   : > { %235 = vmatmul.f32.gmra.mxu0 %v194_v18 }
  0x44   : > { %238 = vmatmul.f32.gmra.mxu0 %v195_v19 }
  0xa9   : > { %v230_v27 = vpop.f32.mrf.mxu0 }
  0xaa   : > { %v1151_v28 = vadd.f32 %v230_v27, %v1148_v24 }
  0xac   : > { %v1154_v30 = vmul.f32 0.70710677, %v1151_v28 }
  0xae   : > { %v250_v32 = vmul.f32 %v1154_v30, %v1154_v30 }
  0xb0   : > { %v1158_v34 = vmin.f32 %v250_v32, 16.0 }
  0xb1   : > { %v233_v36 = vpop.f32.mrf.mxu0 }
  0xb2   : > { %v252_v37 = vmul.f32 2.1237322e-06, %v1158_v34  ;;  %v1162_v38 = vadd.f32 %v233_v36, %v1148_v24  ;;  %v263_v40 = vmul.f32 3.8918573e-05, %v1158_v34 }
  0xb4   : > { %v253_v41 = vadd.f32 0.00028619796, %v252_v37  ;;  %v1166_v42 = vmul.f32 0.70710677, %v1162_v38  ;;  %v264_v44 = vadd.f32 0.001143296, %v263_v40 }
  0xb6   : > { %v254_v45 = vmul.f32 %v253_v41, %v1158_v34  ;;  %v290_v46 = vmul.f32 %v1166_v42, %v1166_v42  ;;  %v265_v48 = vmul.f32 %v264_v44, %v1158_v34 }
  0xb8   : > { %v255_v49 = vadd.f32 0.0036580483, %v254_v45  ;;  %v1172_v50 = vmin.f32 %v290_v46, 16.0  ;;  %v266_v53 = vadd.f32 0.014752088, %v265_v48 }
  0xb9   : > { %v236_v52 = vpop.f32.mrf.mxu0 }
  0xba   : > { %v292_v54 = vmul.f32 2.1237322e-06, %v1172_v50  ;;  %v1176_v55 = vadd.f32 %v236_v52, %v1148_v24  ;;  %v303_v57 = vmul.f32 3.8918573e-05, %v1172_v50  ;;  %v267_v58 = vmul.f32 %v266_v53, %v1158_v34 }
  0xbb   : > { %v256_v59 = vmul.f32 %v255_v49, %v1158_v34 }
  0xbc   : > { %v293_v60 = vadd.f32 0.00028619796, %v292_v54  ;;  %v1182_v62 = vmul.f32 0.70710677, %v1176_v55  ;;  %v268_v63 = vadd.f32 0.112945676, %v267_v58 }
  0xbd   : > { %v304_v0 = vadd.f32 0.001143296, %v303_v57  ;;  %v257_v6 = vadd.f32 0.05243302, %v256_v59 }
  0xbe   : > { %v294_v1 = vmul.f32 %v293_v60, %v1172_v50  ;;  %v330_v3 = vmul.f32 %v1182_v62, %v1182_v62  ;;  %v269_v4 = vmul.f32 %v268_v63, %v1158_v34 }
  0xbf   : > { %v305_v5 = vmul.f32 %v304_v0, %v1172_v50  ;;  %v258_v17 = vmul.f32 %v257_v6, %v1158_v34 }
  0xc0   : > { %v295_v7 = vadd.f32 0.0036580483, %v294_v1  ;;  %v1189_v8 = vmin.f32 %v330_v3, 16.0  ;;  %v270_v10 = vadd.f32 0.4994258, %v269_v4 }
  0xc1   : > { %v239_v9 = vpop.f32.mrf.mxu0  ;;  %v306_v11 = vadd.f32 0.014752088, %v305_v5  ;;  %v259_v27 = vadd.f32 0.18741608, %v258_v17 }
  0xc2   : > { %v1192_v12 = vadd.f32 %v239_v9, %v1148_v24  ;;  %v332_v13 = vmul.f32 2.1237322e-06, %v1189_v8  ;;  %v271_v14 = vmul.f32 %v270_v10, %v1158_v34  ;;  %v343_v16 = vmul.f32 3.8918573e-05, %v1189_v8 }
  0xc3   : > { %v307_v15 = vmul.f32 %v306_v11, %v1172_v50  ;;  %v296_v18 = vmul.f32 %v295_v7, %v1172_v50  ;;  %v260_v41 = vmul.f32 %v259_v27, %v1158_v34 }
  0xc4   : > { %v333_v19 = vadd.f32 0.00028619796, %v332_v13  ;;  %v1201_v20 = vmul.f32 0.70710677, %v1192_v12  ;;  %v272_v21 = vadd.f32 1.0, %v271_v14 }
  0xc5   : > { %v308_v23 = vadd.f32 0.112945676, %v307_v15  ;;  %v344_v24 = vadd.f32 0.001143296, %v343_v16  ;;  %v297_v31 = vadd.f32 0.05243302, %v296_v18 }
  0xc6   : > { %v334_v25 = vmul.f32 %v333_v19, %v1189_v8  ;;  %v370_v26 = vmul.f32 %v1201_v20, %v1201_v20  ;;  %1029 = vrcp.f32 %v272_v21  ;;  %v261_v34 = vadd.f32 1.1283791, %v260_v41 }
  0xc7   : > { %v309_v29 = vmul.f32 %v308_v23, %v1172_v50  ;;  %v345_v33 = vmul.f32 %v344_v24, %v1189_v8  ;;  %v298_v45 = vmul.f32 %v297_v31, %v1172_v50  ;;  %v284_v59 = vand.u32 2147483648, %v272_v21 }
  0xc8   : > { %v1207_v32 = vmin.f32 %v370_v26, 16.0  ;;  %v335_v35 = vadd.f32 0.0036580483, %v334_v25  ;;  %v282_v63 = vand.u32 2147483647, %v272_v21  ;;  %vm278_vm1 = vweird.f32 %v272_v21 }
  0xc9   : > { %v310_v36 = vadd.f32 0.4994258, %v309_v29  ;;  %v346_v39 = vadd.f32 0.014752088, %v345_v33  ;;  %v299_v58 = vadd.f32 0.18741608, %v298_v45  ;;  %v262_v6 = vmul.f32 %v261_v34, %v1154_v30 }
  0xca   : > { %v372_v37 = vmul.f32 2.1237322e-06, %v1207_v32  ;;  %v383_v40 = vmul.f32 3.8918573e-05, %v1207_v32  ;;  %v336_v52 = vmul.f32 %v335_v35, %v1189_v8  ;;  %v285_v7 = vor.u32 1.1754944e-38, %v284_v59 }
  0xcb   : > { %v311_v43 = vmul.f32 %v310_v36, %v1172_v50  ;;  %v347_v47 = vmul.f32 %v346_v39, %v1189_v8  ;;  %v300_v11 = vmul.f32 %v299_v58, %v1172_v50  ;;  %vm283_vm3 = vcmp.eq.f32.partialorder %v282_v63, 8.507059e+37 }
  0xcc   : > { %v1030_v44 = vpop.eup %1029  ;;  %v373_v46 = vadd.f32 0.00028619796, %v372_v37  ;;  %v384_v48 = vadd.f32 0.001143296, %v383_v40  ;;  %v337_v1 = vadd.f32 0.05243302, %v336_v52 }
  0xcd   : > { %v274_v49 = vmul.f32 %v1030_v44, %v272_v21  ;;  %v312_v51 = vadd.f32 1.0, %v311_v43  ;;  %v348_v53 = vadd.f32 0.112945676, %v347_v47  ;;  %vm279_vm0 = vweird.f32 %v1030_v44 }
  0xce   : > { %v385_v54 = vmul.f32 %v384_v48, %v1207_v32  ;;  %v374_v56 = vmul.f32 %v373_v46, %v1207_v32  ;;  %vm280_vm2 = vmor %vm278_vm1, %vm279_vm0  ;;  %v338_v15 = vmul.f32 %v337_v1, %v1189_v8  ;;  %v301_v24 = vadd.f32 1.1283791, %v300_v11 }
  0xcf   : > { %v275_v57 = vsub.f32 1.0, %v274_v49  ;;  %1031 = vrcp.f32 %v312_v51  ;;  %v349_v60 = vmul.f32 %v348_v53, %v1189_v8  ;;  %v324_v26 = vand.u32 2147483648, %v312_v51 }
  0xd0   : > { %v386_v0 = vadd.f32 0.014752088, %v385_v54  ;;  %v375_v3 = vadd.f32 0.0036580483, %v374_v56  ;;  %v322_v50 = vand.u32 2147483647, %v312_v51  ;;  %vm318_vm5 = vweird.f32 %v312_v51 }
  0xd1   : > { %v276_v61 = vmul.f32 %v1030_v44, %v275_v57  ;;  %v350_v2 = vadd.f32 0.4994258, %v349_v60  ;;  %v242_v31 = vmul.f32 0.5, %v1151_v28  ;;  %v339_v33 = vadd.f32 0.18741608, %v338_v15 }
  0xd2   : > { %v387_v5 = vmul.f32 %v386_v0, %v1207_v32  ;;  %v376_v18 = vmul.f32 %v375_v3, %v1207_v32  ;;  %v325_v41 = vor.u32 1.1754944e-38, %v324_v26  ;;  %v302_v43 = vmul.f32 %v301_v24, %v1166_v42 }
  0xd3   : > { %v277_v4 = vadd.f32 %v1030_v44, %v276_v61  ;;  %v351_v9 = vmul.f32 %v350_v2, %v1189_v8  ;;  %vm323_vm7 = vcmp.eq.f32.partialorder %v322_v50, 8.507059e+37  ;;  %v340_v47 = vmul.f32 %v339_v33, %v1189_v8  ;;  %v654_v50 = vld [vmem:[#allocation2 + $0x160] sm:$0xff]  ;;  %v652_v33 = vld [vmem:[#allocation2 + $0x150] sm:$0xff] }
  0xd4   : > { %v388_v14 = vadd.f32 0.112945676, %v387_v5  ;;  %v377_v35 = vadd.f32 0.05243302, %v376_v18  ;;  %v243_v54 = vmul.f32 0.5, %v1162_v38  ;;  %v1239_v26 = vperm.slane %v1145_v22, 1 }
  0xd5   : > { %v1032_v10 = vpop.eup %1031  ;;  %v281_v13 = vsel %vm280_vm2, %v1030_v44, %v277_v4  ;;  %v352_v21 = vadd.f32 1.0, %v351_v9  ;;  %v341_v56 = vadd.f32 1.1283791, %v340_v47 }
  0xd6   : > { %v286_v16 = vsel %vm283_vm3, %v285_v7, %v281_v13  ;;  %v314_v17 = vmul.f32 %v1032_v10, %v312_v51  ;;  %v389_v30 = vmul.f32 %v388_v14, %v1207_v32  ;;  %vm319_vm4 = vweird.f32 %v1032_v10 }
  0xd7   : > { %v287_v19 = vmul.f32 %v286_v16, %v262_v6  ;;  %1033 = vrcp.f32 %v352_v21  ;;  %vm320_vm6 = vmor %vm318_vm5, %vm319_vm4  ;;  %v378_v28 = vmul.f32 %v377_v35, %v1207_v32  ;;  %v364_v42 = vand.u32 2147483648, %v352_v21 }
  0xd8   : > { %v315_v23 = vsub.f32 1.0, %v314_v17  ;;  %v390_v29 = vadd.f32 0.4994258, %v389_v30  ;;  %v362_v59 = vand.u32 2147483647, %v352_v21  ;;  %vm358_vm9 = vweird.f32 %v352_v21 }
  0xd9   : > { %v994_v25 = vclamps-f32 %v287_v19, 1.0  ;;  %v379_v57 = vadd.f32 0.18741608, %v378_v28  ;;  %v365_v0 = vor.u32 1.1754944e-38, %v364_v42  ;;  %v342_v2 = vmul.f32 %v341_v56, %v1182_v62  ;;  %v646_v42 = vld [vmem:[#allocation2 + $0x120] sm:$0xff] }
  0xda   : > { %v316_v27 = vmul.f32 %v1032_v10, %v315_v23  ;;  %v391_v39 = vmul.f32 %v390_v29, %v1207_v32  ;;  %vm363_vm11 = vcmp.eq.f32.partialorder %v362_v59, 8.507059e+37  ;;  %v245_v30 = vmul.f32 0.5, %v1192_v12 }
  0xdb   : > { %v410_v36 = vadd.f32 1.0, %v994_v25  ;;  %v380_v63 = vmul.f32 %v379_v57, %v1207_v32  ;;  %v244_v32 = vmul.f32 0.5, %v1176_v55  ;;  %v657_v25 = vld [vmem:[#allocation2 + $0x178] sm:$0xff]  ;;  %v656_v55 = vld [vmem:[#allocation2 + $0x170] sm:$0xff] }
  0xdc   : > { %v317_v37 = vadd.f32 %v1032_v10, %v316_v27  ;;  %v392_v45 = vadd.f32 1.0, %v391_v39  ;;  %659 = vmatpush.msra.mxu2 %v657_v25  ;;  %v650_v39 = vld [vmem:[#allocation2 + $0x140] sm:$0xff] }
  0xdd   : > { %v414_v40 = vmul.f32 %v410_v36, %v242_v31  ;;  %v1034_v46 = vpop.eup %1033  ;;  %v381_v7 = vadd.f32 1.1283791, %v380_v63  ;;  %v653_v31 = vld [vmem:[#allocation2 + $0x158] sm:$0xff]  ;;  %v651_v36 = vld [vmem:[#allocation2 + $0x148] sm:$0xff] }
  0xde   : > { %v321_v44 = vsel %vm320_vm6, %v1032_v10, %v317_v37  ;;  %v354_v52 = vmul.f32 %v1034_v46, %v352_v21  ;;  %1035 = vrcp.f32 %v392_v45  ;;  %vm359_vm8 = vweird.f32 %v1034_v46  ;;  %660 = vmatpush.msra.mxu2 %v656_v55 }
  0xdf   : > { %452 = vmatmul.f32.vlgmr.msra.gmra.mxu1 %v414_v40  ;;  %v326_v48 = vsel %vm323_vm7, %v325_v41, %v321_v44  ;;  %vm360_vm10 = vmor %vm358_vm9, %vm359_vm8  ;;  %v404_v6 = vand.u32 2147483648, %v392_v45  ;;  %v402_v10 = vand.u32 2147483647, %v392_v45  ;;  %vm398_vm13 = vweird.f32 %v392_v45 }
  0xe0   : > { %v327_v49 = vmul.f32 %v326_v48, %v302_v43  ;;  %v355_v53 = vsub.f32 1.0, %v354_v52  ;;  %v382_v62 = vmul.f32 %v381_v7, %v1201_v20  ;;  %v655_v20 = vld [vmem:[#allocation2 + $0x168] sm:$0xff]  ;;  %v648_v48 = vld [vmem:[#allocation2 + $0x130] sm:$0xff] }
  0xe1   : > { %v405_v15 = vor.u32 1.1754944e-38, %v404_v6  ;;  %vm403_vm15 = vcmp.eq.f32.partialorder %v402_v10, 8.507059e+37  ;;  %661 = vmatpush.msra.mxu2 %v655_v20  ;;  %v643_v7 = vld [vmem:[#allocation2 + $0x108] sm:$0xff] }
  0xe2   : > { %v995_v51 = vclamps-f32 %v327_v49, 1.0  ;;  %v356_v58 = vmul.f32 %v1034_v46, %v355_v53  ;;  %v647_v53 = vld [vmem:[#allocation2 + $0x128] sm:$0xff] }
  0xe3   : > { %662 = vmatpush.msra.mxu2 %v654_v50 }
  0xe4   : > { %v411_v34 = vadd.f32 1.0, %v995_v51  ;;  %v1036_v60 = vpop.eup %1035  ;;  %v357_v61 = vadd.f32 %v1034_v46, %v356_v58 }
  0xe5   : > { %v394_v1 = vmul.f32 %v1036_v60, %v392_v45  ;;  %vm399_vm12 = vweird.f32 %v1036_v60  ;;  %663 = vmatpush.msra.mxu2 %v653_v31  ;;  %v649_v45 = vld [vmem:[#allocation2 + $0x138] sm:$0xff] }
  0xe6   : > { %v415_v8 = vmul.f32 %v411_v34, %v243_v54  ;;  %v361_v38 = vsel %vm360_vm10, %v1034_v46, %v357_v61  ;;  %vm400_vm14 = vmor %vm398_vm13, %vm399_vm12 }
  0xe7   : > { %v366_v3 = vsel %vm363_vm11, %v365_v0, %v361_v38  ;;  %v395_v4 = vsub.f32 1.0, %v394_v1  ;;  %664 = vmatpush.msra.mxu2 %v652_v33 }
  0xe8   : > { %455 = vmatmul.f32.gmra.mxu1 %v415_v8  ;;  %v367_v5 = vmul.f32 %v366_v3, %v342_v2  ;;  %v644_v2 = vld [vmem:[#allocation2 + $0x110] sm:$0xff] }
  0xe9   : > { %v396_v9 = vmul.f32 %v1036_v60, %v395_v4  ;;  %665 = vmatpush.msra.mxu2 %v651_v36 }
  0xea   : > { %v996_v11 = vclamps-f32 %v367_v5, 1.0 }
  0xeb   : > { %v397_v13 = vadd.f32 %v1036_v60, %v396_v9  ;;  %666 = vmatpush.msra.mxu2 %v650_v39 }
  0xec   : > { %v412_v14 = vadd.f32 1.0, %v996_v11 }
  0xed   : > { %v401_v16 = vsel %vm400_vm14, %v1036_v60, %v397_v13  ;;  %667 = vmatpush.msra.mxu2 %v649_v45  ;;  %v645_v60 = vld [vmem:[#allocation2 + $0x118] sm:$0xff]  ;;  %v642_v13 = vld [vmem:[#allocation2 + $0x100] sm:$0xff] }
  0xee   : > { %v416_v17 = vmul.f32 %v412_v14, %v244_v32  ;;  %v406_v18 = vsel %vm403_vm15, %v405_v15, %v401_v16 }
  0xef   : > { %v407_v19 = vmul.f32 %v406_v18, %v382_v62  ;;  %668 = vmatpush.msra.mxu2 %v648_v48 }
  0xf0   : > { %458 = vmatmul.f32.gmra.mxu1 %v416_v17 }
  0xf1   : > { %v997_v21 = vclamps-f32 %v407_v19, 1.0  ;;  %669 = vmatpush.msra.mxu2 %v647_v53 }
  0xf3   : > { %v413_v23 = vadd.f32 1.0, %v997_v21  ;;  %670 = vmatpush.msra.mxu2 %v646_v42 }
  0xf5   : > { %v417_v24 = vmul.f32 %v413_v23, %v245_v30  ;;  %671 = vmatpush.msra.mxu2 %v645_v60 }
  0xf7   : > { %672 = vmatpush.msra.mxu2 %v644_v2 }
  0xf8   : > { %461 = vmatmul.f32.gmra.mxu1 %v417_v24 }
  0xf9   : > { %673 = vmatpush.msra.mxu2 %v643_v7 }
  0xfb   : > { %674 = vmatpush.msra.mxu2 %v642_v13 }
 0x15c   : > { %v453_v27 = vpop.f32.mrf.mxu1 }
 0x15d   : > { %v1242_v29 = vadd.f32 %v453_v27, %v1239_v26 }
 0x15f   : > { %v1245_v12 = vmul.f32 0.70710677, %v1242_v29 }
 0x161   : > { %v473_v35 = vmul.f32 %v1245_v12, %v1245_v12 }
 0x163   : > { %v1249_v37 = vmin.f32 %v473_v35, 16.0 }
 0x165   : > { %v475_v40 = vmul.f32 2.1237322e-06, %v1249_v37  ;;  %v456_v41 = vpop.f32.mrf.mxu1  ;;  %v486_v43 = vmul.f32 3.8918573e-05, %v1249_v37 }
 0x166   : > { %v1254_v44 = vadd.f32 %v456_v41, %v1239_v26 }
 0x167   : > { %v476_v46 = vadd.f32 0.00028619796, %v475_v40  ;;  %v487_v47 = vadd.f32 0.001143296, %v486_v43 }
 0x168   : > { %v1257_v28 = vmul.f32 0.70710677, %v1254_v44 }
 0x169   : > { %v477_v49 = vmul.f32 %v476_v46, %v1249_v37  ;;  %v488_v52 = vmul.f32 %v487_v47, %v1249_v37 }
 0x16a   : > { %v513_v51 = vmul.f32 %v1257_v28, %v1257_v28 }
 0x16b   : > { %v478_v54 = vadd.f32 0.0036580483, %v477_v49  ;;  %v489_v56 = vadd.f32 0.014752088, %v488_v52 }
 0x16c   : > { %v1263_v57 = vmin.f32 %v513_v51, 16.0 }
 0x16d   : > { %v490_v34 = vmul.f32 %v489_v56, %v1249_v37  ;;  %v479_v58 = vmul.f32 %v478_v54, %v1249_v37  ;;  %v459_v61 = vpop.f32.mrf.mxu1 }
 0x16e   : > { %v515_v59 = vmul.f32 2.1237322e-06, %v1263_v57  ;;  %v526_v8 = vmul.f32 3.8918573e-05, %v1263_v57  ;;  %v1270_v1 = vadd.f32 %v459_v61, %v1239_v26 }
 0x16f   : > { %v491_v63 = vadd.f32 0.112945676, %v490_v34  ;;  %v480_v4 = vadd.f32 0.05243302, %v479_v58 }
 0x170   : > { %v516_v0 = vadd.f32 0.00028619796, %v515_v59  ;;  %v527_v38 = vadd.f32 0.001143296, %v526_v8  ;;  %v1275_v6 = vmul.f32 0.70710677, %v1270_v1 }
 0x171   : > { %v492_v3 = vmul.f32 %v491_v63, %v1249_v37  ;;  %v481_v62 = vmul.f32 %v480_v4, %v1249_v37 }
 0x172   : > { %v517_v5 = vmul.f32 %v516_v0, %v1263_v57  ;;  %v528_v9 = vmul.f32 %v527_v38, %v1263_v57  ;;  %v553_v11 = vmul.f32 %v1275_v6, %v1275_v6 }
 0x173   : > { %v493_v10 = vadd.f32 0.4994258, %v492_v3  ;;  %v482_v25 = vadd.f32 0.18741608, %v481_v62 }
 0x174   : > { %v529_v32 = vadd.f32 0.014752088, %v528_v9  ;;  %v518_v14 = vadd.f32 0.0036580483, %v517_v5  ;;  %v1282_v16 = vmin.f32 %v553_v11, 16.0 }
 0x175   : > { %v494_v15 = vmul.f32 %v493_v10, %v1249_v37  ;;  %v462_v18 = vpop.f32.mrf.mxu1  ;;  %v483_v36 = vmul.f32 %v482_v25, %v1249_v37 }
 0x176   : > { %v530_v17 = vmul.f32 %v529_v32, %v1263_v57  ;;  %v555_v21 = vmul.f32 2.1237322e-06, %v1282_v16  ;;  %v1287_v30 = vadd.f32 %v462_v18, %v1239_v26  ;;  %v519_v24 = vmul.f32 %v518_v14, %v1263_v57 }
 0x177   : > { %v495_v19 = vadd.f32 1.0, %v494_v15  ;;  %v566_v27 = vmul.f32 3.8918573e-05, %v1282_v16  ;;  %v484_v53 = vadd.f32 1.1283791, %v483_v36 }
 0x178   : > { %v531_v23 = vadd.f32 0.112945676, %v530_v17  ;;  %v1291_v55 = vmul.f32 0.70710677, %v1287_v30  ;;  %v556_v50 = vadd.f32 0.00028619796, %v555_v21 }
 0x179   : > { %1037 = vrcp.f32 %v495_v19  ;;  %v520_v33 = vadd.f32 0.05243302, %v519_v24  ;;  %v567_v26 = vadd.f32 0.001143296, %v566_v27  ;;  %v505_v56 = vand.u32 2147483647, %v495_v19 }
 0x17a   : > { %v532_v20 = vmul.f32 %v531_v23, %v1263_v57  ;;  %v593_v31 = vmul.f32 %v1291_v55, %v1291_v55  ;;  %v557_v45 = vmul.f32 %v556_v50, %v1282_v16  ;;  %v507_v42 = vand.u32 2147483648, %v495_v19 }
 0x17b   : > { %v568_v43 = vmul.f32 %v567_v26, %v1282_v16  ;;  %v521_v48 = vmul.f32 %v520_v33, %v1263_v57  ;;  %vm501_vm1 = vweird.f32 %v495_v19  ;;  %v485_v0 = vmul.f32 %v484_v53, %v1245_v12 }
 0x17c   : > { %v533_v35 = vadd.f32 0.4994258, %v532_v20  ;;  %v1298_v39 = vmin.f32 %v593_v31, 16.0  ;;  %v558_v34 = vadd.f32 0.0036580483, %v557_v45  ;;  %v508_v38 = vor.u32 1.1754944e-38, %v507_v42 }
 0x17d   : > { %v569_v52 = vadd.f32 0.014752088, %v568_v43  ;;  %v522_v60 = vadd.f32 0.18741608, %v521_v48  ;;  %vm506_vm3 = vcmp.eq.f32.partialorder %v505_v56, 8.507059e+37  ;;  %v465_v17 = vmul.f32 0.5, %v1242_v29 }
 0x17e   : > { %v534_v41 = vmul.f32 %v533_v35, %v1263_v57  ;;  %v595_v46 = vmul.f32 2.1237322e-06, %v1298_v39  ;;  %v606_v51 = vmul.f32 3.8918573e-05, %v1298_v39  ;;  %v559_v4 = vmul.f32 %v558_v34, %v1282_v16 }
 0x17f   : > { %v1038_v40 = vpop.eup %1037  ;;  %v570_v59 = vmul.f32 %v569_v52, %v1282_v16  ;;  %v523_v10 = vmul.f32 %v522_v60, %v1263_v57 }
 0x180   : > { %v497_v47 = vmul.f32 %v1038_v40, %v495_v19  ;;  %v535_v49 = vadd.f32 1.0, %v534_v41  ;;  %v596_v54 = vadd.f32 0.00028619796, %v595_v46  ;;  %vm502_vm0 = vweird.f32 %v1038_v40 }
 0x181   : > { %v607_v8 = vadd.f32 0.001143296, %v606_v51  ;;  %v571_v63 = vadd.f32 0.112945676, %v570_v59  ;;  %vm503_vm2 = vmor %vm501_vm1, %vm502_vm0  ;;  %v560_v18 = vadd.f32 0.05243302, %v559_v4 }
 0x182   : > { %v498_v37 = vsub.f32 1.0, %v497_v47  ;;  %1039 = vrcp.f32 %v535_v49  ;;  %v597_v2 = vmul.f32 %v596_v54, %v1298_v39  ;;  %v524_v23 = vadd.f32 1.1283791, %v523_v10 }
 0x183   : > { %v608_v3 = vmul.f32 %v607_v8, %v1298_v39  ;;  %v572_v7 = vmul.f32 %v571_v63, %v1282_v16  ;;  %v547_v24 = vand.u32 2147483648, %v535_v49  ;;  %v545_v50 = vand.u32 2147483647, %v535_v49 }
 0x184   : > { %v499_v58 = vmul.f32 %v1038_v40, %v498_v37  ;;  %v598_v12 = vadd.f32 0.0036580483, %v597_v2  ;;  %v561_v26 = vmul.f32 %v560_v18, %v1282_v16  ;;  %vm541_vm5 = vweird.f32 %v535_v49 }
 0x185   : > { %v609_v13 = vadd.f32 0.014752088, %v608_v3  ;;  %v573_v15 = vadd.f32 0.4994258, %v572_v7  ;;  %v525_v41 = vmul.f32 %v524_v23, %v1257_v28  ;;  %vm546_vm7 = vcmp.eq.f32.partialorder %v545_v50, 8.507059e+37 }
 0x186   : > { %v500_v61 = vadd.f32 %v1038_v40, %v499_v58  ;;  %v599_v31 = vmul.f32 %v598_v12, %v1298_v39  ;;  %v562_v48 = vadd.f32 0.18741608, %v561_v26 }
 0x187   : > { %v610_v62 = vmul.f32 %v609_v13, %v1298_v39  ;;  %v574_v25 = vmul.f32 %v573_v15, %v1282_v16 }
 0x188   : > { %v504_v5 = vsel %vm503_vm2, %v1038_v40, %v500_v61  ;;  %v1040_v9 = vpop.eup %1039  ;;  %v548_v40 = vor.u32 1.1754944e-38, %v547_v24  ;;  %v600_v46 = vadd.f32 0.05243302, %v599_v31  ;;  %v563_v42 = vmul.f32 %v562_v48, %v1282_v16  ;;  %v879_v31 = vld [vmem:[#allocation2 + $0x1f0] sm:$0xff] }
 0x189   : > { %v509_v11 = vsel %vm506_vm3, %v508_v38, %v504_v5  ;;  %v537_v14 = vmul.f32 %v1040_v9, %v535_v49  ;;  %v611_v20 = vadd.f32 0.112945676, %v610_v62  ;;  %vm542_vm4 = vweird.f32 %v1040_v9 }
 0x18a   : > { %v510_v32 = vmul.f32 %v509_v11, %v485_v0  ;;  %v575_v33 = vadd.f32 1.0, %v574_v25  ;;  %vm543_vm6 = vmor %vm541_vm5, %vm542_vm4  ;;  %v466_v49 = vmul.f32 0.5, %v1254_v44  ;;  %v601_v56 = vmul.f32 %v600_v46, %v1298_v39 }
 0x18b   : > { %v538_v21 = vsub.f32 1.0, %v537_v14  ;;  %v612_v35 = vmul.f32 %v611_v20, %v1298_v39  ;;  %v564_v61 = vadd.f32 1.1283791, %v563_v42  ;;  %v468_v25 = vmul.f32 0.5, %v1287_v30  ;;  %v877_v30 = vld [vmem:[#allocation2 + $0x1e0] sm:$0xff] }
 0x18c   : > { %v998_v19 = vclamps-f32 %v510_v32, 1.0  ;;  %1041 = vrcp.f32 %v575_v33  ;;  %v602_v60 = vadd.f32 0.18741608, %v601_v56  ;;  %v587_v8 = vand.u32 2147483648, %v575_v33 }
 0x18d   : > { %v539_v57 = vmul.f32 %v1040_v9, %v538_v21  ;;  %v613_v45 = vadd.f32 0.4994258, %v612_v35  ;;  %v585_v0 = vand.u32 2147483647, %v575_v33  ;;  %vm581_vm9 = vweird.f32 %v575_v33 }
 0x18e   : > { %v633_v27 = vadd.f32 1.0, %v998_v19  ;;  %v603_v44 = vmul.f32 %v602_v60, %v1298_v39  ;;  %v588_v3 = vor.u32 1.1754944e-38, %v587_v8  ;;  %v565_v4 = vmul.f32 %v564_v61, %v1275_v6  ;;  %v870_v60 = vld [vmem:[#allocation2 + $0x1a8] sm:$0xff] }
 0x18f   : > { %v540_v36 = vadd.f32 %v1040_v9, %v539_v57  ;;  %v614_v51 = vmul.f32 %v613_v45, %v1298_v39  ;;  %vm586_vm11 = vcmp.eq.f32.partialorder %v585_v0, 8.507059e+37  ;;  %v467_v39 = vmul.f32 0.5, %v1270_v1  ;;  %v880_v1 = vld [vmem:[#allocation2 + $0x1f8] sm:$0xff]  ;;  %v874_v45 = vld [vmem:[#allocation2 + $0x1c8] sm:$0xff] }
 0x190   : > { %v637_v29 = vmul.f32 %v633_v27, %v465_v17  ;;  %v604_v13 = vadd.f32 1.1283791, %v603_v44  ;;  %v1330_v57 = vperm.slane %v1145_v22, 2  ;;  %882 = vmatpush.msra.mxu3 %v880_v1  ;;  %v876_v22 = vld [vmem:[#allocation2 + $0x1d8] sm:$0xff] }
 0x191   : > { %v544_v43 = vsel %vm543_vm6, %v1040_v9, %v540_v36  ;;  %v615_v37 = vadd.f32 1.0, %v614_v51  ;;  %v875_v36 = vld [vmem:[#allocation2 + $0x1d0] sm:$0xff] }
 0x192   : > { %675 = vmatmul.f32.vlgmr.msra.gmra.mxu2 %v637_v29  ;;  %v549_v47 = vsel %vm546_vm7, %v548_v40, %v544_v43  ;;  %v1042_v54 = vpop.eup %1041  ;;  %v605_v6 = vmul.f32 %v604_v13, %v1291_v55  ;;  %883 = vmatpush.msra.mxu3 %v879_v31 }
 0x193   : > { %v550_v52 = vmul.f32 %v549_v47, %v525_v41  ;;  %v577_v34 = vmul.f32 %v1042_v54, %v575_v33  ;;  %1043 = vrcp.f32 %v615_v37  ;;  %vm582_vm8 = vweird.f32 %v1042_v54  ;;  %v878_v33 = vld [vmem:[#allocation2 + $0x1e8] sm:$0xff] }
 0x194   : > { %vm583_vm10 = vmor %vm581_vm9, %vm582_vm8  ;;  %v627_v11 = vand.u32 2147483648, %v615_v37  ;;  %v625_v14 = vand.u32 2147483647, %v615_v37  ;;  %vm621_vm13 = vweird.f32 %v615_v37  ;;  %884 = vmatpush.msra.mxu3 %v878_v33 }
 0x195   : > { %v999_v53 = vclamps-f32 %v550_v52, 1.0  ;;  %v578_v59 = vsub.f32 1.0, %v577_v34  ;;  %v873_v52 = vld [vmem:[#allocation2 + $0x1c0] sm:$0xff] }
 0x196   : > { %v628_v17 = vor.u32 1.1754944e-38, %v627_v11  ;;  %vm626_vm15 = vcmp.eq.f32.partialorder %v625_v14, 8.507059e+37  ;;  %885 = vmatpush.msra.mxu3 %v877_v30  ;;  %v866_v14 = vld [vmem:[#allocation2 + $0x188] sm:$0xff] }
 0x197   : > { %v634_v28 = vadd.f32 1.0, %v999_v53  ;;  %v579_v63 = vmul.f32 %v1042_v54, %v578_v59 }
 0x198   : > { %886 = vmatpush.msra.mxu3 %v876_v22 }
 0x199   : > { %v638_v58 = vmul.f32 %v634_v28, %v466_v49  ;;  %v1044_v2 = vpop.eup %1043  ;;  %v580_v38 = vadd.f32 %v1042_v54, %v579_v63  ;;  %v871_v28 = vld [vmem:[#allocation2 + $0x1b0] sm:$0xff]  ;;  %v869_v63 = vld [vmem:[#allocation2 + $0x1a0] sm:$0xff] }
 0x19a   : > { %v617_v16 = vmul.f32 %v1044_v2, %v615_v37  ;;  %vm622_vm12 = vweird.f32 %v1044_v2  ;;  %887 = vmatpush.msra.mxu3 %v875_v36 }
 0x19b   : > { %678 = vmatmul.f32.gmra.mxu2 %v638_v58  ;;  %v584_v5 = vsel %vm583_vm10, %v1042_v54, %v580_v38  ;;  %vm623_vm14 = vmor %vm621_vm13, %vm622_vm12  ;;  %v872_v54 = vld [vmem:[#allocation2 + $0x1b8] sm:$0xff] }
 0x19c   : > { %v589_v7 = vsel %vm586_vm11, %v588_v3, %v584_v5  ;;  %v618_v9 = vsub.f32 1.0, %v617_v16  ;;  %888 = vmatpush.msra.mxu3 %v874_v45  ;;  %v868_v3 = vld [vmem:[#allocation2 + $0x198] sm:$0xff] }
 0x19d   : > { %v590_v10 = vmul.f32 %v589_v7, %v565_v4 }
 0x19e   : > { %v619_v32 = vmul.f32 %v1044_v2, %v618_v9  ;;  %889 = vmatpush.msra.mxu3 %v873_v52  ;;  %v867_v9 = vld [vmem:[#allocation2 + $0x190] sm:$0xff] }
 0x19f   : > { %v1000_v12 = vclamps-f32 %v590_v10, 1.0 }
 0x1a0   : > { %v620_v15 = vadd.f32 %v1044_v2, %v619_v32  ;;  %890 = vmatpush.msra.mxu3 %v872_v54 }
 0x1a1   : > { %v635_v62 = vadd.f32 1.0, %v1000_v12 }
 0x1a2   : > { %v624_v18 = vsel %vm623_vm14, %v1044_v2, %v620_v15  ;;  %891 = vmatpush.msra.mxu3 %v871_v28 }
 0x1a3   : > { %v639_v19 = vmul.f32 %v635_v62, %v467_v39  ;;  %v629_v21 = vsel %vm626_vm15, %v628_v17, %v624_v18  ;;  %v865_v62 = vld [vmem:[#allocation2 + $0x180] sm:$0xff] }
 0x1a4   : > { %v630_v23 = vmul.f32 %v629_v21, %v605_v6  ;;  %892 = vmatpush.msra.mxu3 %v870_v60 }
 0x1a5   : > { %681 = vmatmul.f32.gmra.mxu2 %v639_v19 }
 0x1a6   : > { %v1001_v24 = vclamps-f32 %v630_v23, 1.0  ;;  %893 = vmatpush.msra.mxu3 %v869_v63 }
 0x1a8   : > { %v636_v20 = vadd.f32 1.0, %v1001_v24  ;;  %894 = vmatpush.msra.mxu3 %v868_v3 }
 0x1aa   : > { %v640_v27 = vmul.f32 %v636_v20, %v468_v25  ;;  %895 = vmatpush.msra.mxu3 %v867_v9 }
 0x1ac   : > { %896 = vmatpush.msra.mxu3 %v866_v14 }
 0x1ad   : > { %684 = vmatmul.f32.gmra.mxu2 %v640_v27 }
 0x1ae   : > { %897 = vmatpush.msra.mxu3 %v865_v62 }
 0x215   : > { %v676_v50 = vpop.f32.mrf.mxu2 }
 0x216   : > { %v1333_v55 = vadd.f32 %v676_v50, %v1330_v57 }
 0x218   : > { %v1336_v35 = vmul.f32 0.70710677, %v1333_v55 }
 0x21a   : > { %v696_v26 = vmul.f32 %v1336_v35, %v1336_v35 }
 0x21c   : > { %v1340_v29 = vmin.f32 %v696_v26, 16.0 }
 0x21e   : > { %v698_v40 = vmul.f32 2.1237322e-06, %v1340_v29  ;;  %v709_v41 = vmul.f32 3.8918573e-05, %v1340_v29  ;;  %v679_v43 = vpop.f32.mrf.mxu2 }
 0x21f   : > { %v1345_v47 = vadd.f32 %v679_v43, %v1330_v57 }
 0x220   : > { %v699_v46 = vadd.f32 0.00028619796, %v698_v40  ;;  %v710_v48 = vadd.f32 0.001143296, %v709_v41 }
 0x221   : > { %v1349_v53 = vmul.f32 0.70710677, %v1345_v47 }
 0x222   : > { %v700_v51 = vmul.f32 %v699_v46, %v1340_v29  ;;  %v711_v37 = vmul.f32 %v710_v48, %v1340_v29 }
 0x223   : > { %v736_v56 = vmul.f32 %v1349_v53, %v1349_v53 }
 0x224   : > { %v701_v49 = vadd.f32 0.0036580483, %v700_v51  ;;  %v712_v42 = vadd.f32 0.014752088, %v711_v37 }
 0x225   : > { %v1354_v34 = vmin.f32 %v736_v56, 16.0 }
 0x226   : > { %v713_v58 = vmul.f32 %v712_v42, %v1340_v29  ;;  %v702_v59 = vmul.f32 %v701_v49, %v1340_v29 }
 0x227   : > { %v738_v8 = vmul.f32 2.1237322e-06, %v1354_v34  ;;  %v749_v0 = vmul.f32 3.8918573e-05, %v1354_v34 }
 0x228   : > { %v714_v61 = vadd.f32 0.112945676, %v713_v58  ;;  %v703_v44 = vadd.f32 0.05243302, %v702_v59  ;;  %v682_v7 = vpop.f32.mrf.mxu2 }
 0x229   : > { %v739_v2 = vadd.f32 0.00028619796, %v738_v8  ;;  %v750_v16 = vadd.f32 0.001143296, %v749_v0  ;;  %v1364_v11 = vadd.f32 %v682_v7, %v1330_v57 }
 0x22a   : > { %v715_v38 = vmul.f32 %v714_v61, %v1340_v29  ;;  %v704_v32 = vmul.f32 %v703_v44, %v1340_v29 }
 0x22b   : > { %v740_v5 = vmul.f32 %v739_v2, %v1354_v34  ;;  %v751_v10 = vmul.f32 %v750_v16, %v1354_v34  ;;  %v1369_v15 = vmul.f32 0.70710677, %v1364_v11 }
 0x22c   : > { %v716_v4 = vadd.f32 0.4994258, %v715_v38  ;;  %v705_v19 = vadd.f32 0.18741608, %v704_v32 }
 0x22d   : > { %v752_v12 = vadd.f32 0.014752088, %v751_v10  ;;  %v741_v39 = vadd.f32 0.0036580483, %v740_v5  ;;  %v776_v18 = vmul.f32 %v1369_v15, %v1369_v15 }
 0x22e   : > { %v717_v13 = vmul.f32 %v716_v4, %v1340_v29  ;;  %v706_v50 = vmul.f32 %v705_v19, %v1340_v29 }
 0x22f   : > { %v753_v6 = vmul.f32 %v752_v12, %v1354_v34  ;;  %v1374_v21 = vmin.f32 %v776_v18, 16.0  ;;  %v742_v24 = vmul.f32 %v741_v39, %v1354_v34 }
 0x230   : > { %v718_v17 = vadd.f32 1.0, %v717_v13  ;;  %v685_v25 = vpop.f32.mrf.mxu2 }
 0x231   : > { %v754_v23 = vadd.f32 0.112945676, %v753_v6  ;;  %v778_v20 = vmul.f32 2.1237322e-06, %v1374_v21  ;;  %v1379_v27 = vadd.f32 %v685_v25, %v1330_v57  ;;  %v789_v31 = vmul.f32 3.8918573e-05, %v1374_v21 }
 0x232   : > { %1045 = vrcp.f32 %v718_v17  ;;  %v743_v22 = vadd.f32 0.05243302, %v742_v24  ;;  %v707_v57 = vadd.f32 1.1283791, %v706_v50  ;;  %v728_v51 = vand.u32 2147483647, %v718_v17 }
 0x233   : > { %v755_v1 = vmul.f32 %v754_v23, %v1354_v34  ;;  %v779_v33 = vadd.f32 0.00028619796, %v778_v20  ;;  %v1385_v30 = vmul.f32 0.70710677, %v1379_v27  ;;  %v790_v40 = vadd.f32 0.001143296, %v789_v31 }
 0x234   : > { %v744_v37 = vmul.f32 %v743_v22, %v1354_v34  ;;  %v730_v54 = vand.u32 2147483648, %v718_v17  ;;  %vm724_vm1 = vweird.f32 %v718_v17  ;;  %v708_v38 = vmul.f32 %v707_v57, %v1336_v35 }
 0x235   : > { %v756_v36 = vadd.f32 0.4994258, %v755_v1  ;;  %v816_v41 = vmul.f32 %v1385_v30, %v1385_v30  ;;  %v791_v46 = vmul.f32 %v790_v40, %v1374_v21  ;;  %v780_v29 = vmul.f32 %v779_v33, %v1374_v21 }
 0x236   : > { %v745_v63 = vadd.f32 0.18741608, %v744_v37  ;;  %v731_v0 = vor.u32 1.1754944e-38, %v730_v54  ;;  %vm729_vm3 = vcmp.eq.f32.partialorder %v728_v51, 8.507059e+37  ;;  %v688_v6 = vmul.f32 0.5, %v1333_v55 }
 0x237   : > { %v757_v45 = vmul.f32 %v756_v36, %v1354_v34  ;;  %v1392_v48 = vmin.f32 %v816_v41, 16.0  ;;  %v792_v56 = vadd.f32 0.014752088, %v791_v46  ;;  %v781_v59 = vadd.f32 0.0036580483, %v780_v29 }
 0x238   : > { %v1046_v26 = vpop.eup %1045  ;;  %v746_v32 = vmul.f32 %v745_v63, %v1354_v34 }
 0x239   : > { %v720_v43 = vmul.f32 %v1046_v26, %v718_v17  ;;  %v758_v49 = vadd.f32 1.0, %v757_v45  ;;  %v818_v42 = vmul.f32 2.1237322e-06, %v1392_v48  ;;  %vm725_vm0 = vweird.f32 %v1046_v26 }
 0x23a   : > { %v829_v58 = vmul.f32 3.8918573e-05, %v1392_v48  ;;  %v793_v61 = vmul.f32 %v792_v56, %v1374_v21  ;;  %vm726_vm2 = vmor %vm724_vm1, %vm725_vm0  ;;  %v782_v7 = vmul.f32 %v781_v59, %v1374_v21  ;;  %v747_v24 = vadd.f32 1.1283791, %v746_v32 }
 0x23b   : > { %v721_v52 = vsub.f32 1.0, %v720_v43  ;;  %1047 = vrcp.f32 %v758_v49  ;;  %v819_v60 = vadd.f32 0.00028619796, %v818_v42  ;;  %v770_v25 = vand.u32 2147483648, %v758_v49 }
 0x23c   : > { %v830_v2 = vadd.f32 0.001143296, %v829_v58  ;;  %v794_v3 = vadd.f32 0.112945676, %v793_v61  ;;  %v783_v18 = vadd.f32 0.05243302, %v782_v7  ;;  %vm764_vm5 = vweird.f32 %v758_v49 }
 0x23d   : > { %v722_v28 = vmul.f32 %v1046_v26, %v721_v52  ;;  %v820_v16 = vmul.f32 %v819_v60, %v1392_v48  ;;  %v768_v34 = vand.u32 2147483647, %v758_v49  ;;  %v771_v40 = vor.u32 1.1754944e-38, %v770_v25 }
 0x23e   : > { %v831_v5 = vmul.f32 %v830_v2, %v1392_v48  ;;  %v795_v10 = vmul.f32 %v794_v3, %v1374_v21  ;;  %v784_v36 = vmul.f32 %v783_v18, %v1374_v21  ;;  %v748_v41 = vmul.f32 %v747_v24, %v1349_v53 }
 0x23f   : > { %v723_v8 = vadd.f32 %v1046_v26, %v722_v28  ;;  %v821_v35 = vadd.f32 0.0036580483, %v820_v16  ;;  %vm769_vm7 = vcmp.eq.f32.partialorder %v768_v34, 8.507059e+37  ;;  %v689_v42 = vmul.f32 0.5, %v1345_v47 }
 0x240   : > { %v832_v14 = vadd.f32 0.014752088, %v831_v5  ;;  %v796_v62 = vadd.f32 0.4994258, %v795_v10  ;;  %v785_v29 = vadd.f32 0.18741608, %v784_v36 }
 0x241   : > { %v727_v44 = vsel %vm726_vm2, %v1046_v26, %v723_v8  ;;  %v1048_v13 = vpop.eup %1047  ;;  %v822_v33 = vmul.f32 %v821_v35, %v1392_v48  ;;  %v691_v24 = vmul.f32 0.5, %v1379_v27 }
 0x242   : > { %v732_v4 = vsel %vm729_vm3, %v731_v0, %v727_v44  ;;  %v760_v39 = vmul.f32 %v1048_v13, %v758_v49  ;;  %v833_v17 = vmul.f32 %v832_v14, %v1392_v48  ;;  %v797_v20 = vmul.f32 %v796_v62, %v1374_v21 }
 0x243   : > { %v733_v9 = vmul.f32 %v732_v4, %v708_v38  ;;  %vm765_vm4 = vweird.f32 %v1048_v13  ;;  %v823_v45 = vadd.f32 0.05243302, %v822_v33  ;;  %v786_v28 = vmul.f32 %v785_v29, %v1374_v21 }
 0x244   : > { %v761_v23 = vsub.f32 1.0, %v760_v39  ;;  %v834_v1 = vadd.f32 0.112945676, %v833_v17  ;;  %v798_v26 = vadd.f32 1.0, %v797_v20  ;;  %vm766_vm6 = vmor %vm764_vm5, %vm765_vm4 }
 0x245   : > { %v1002_v12 = vclamps-f32 %v733_v9, 1.0  ;;  %v824_v49 = vmul.f32 %v823_v45, %v1392_v48  ;;  %v787_v63 = vadd.f32 1.1283791, %v786_v28 }
 0x246   : > { %v762_v31 = vmul.f32 %v1048_v13, %v761_v23  ;;  %v835_v22 = vmul.f32 %v834_v1, %v1392_v48  ;;  %1049 = vrcp.f32 %v798_v26  ;;  %v810_v61 = vand.u32 2147483648, %v798_v26 }
 0x247   : > { %v856_v19 = vadd.f32 1.0, %v1002_v12  ;;  %v825_v8 = vadd.f32 0.18741608, %v824_v49  ;;  %v808_v2 = vand.u32 2147483647, %v798_v26  ;;  %vm804_vm9 = vweird.f32 %v798_v26 }
 0x248   : > { %v763_v55 = vadd.f32 %v1048_v13, %v762_v31  ;;  %v836_v57 = vadd.f32 0.4994258, %v835_v22  ;;  %v811_v3 = vor.u32 1.1754944e-38, %v810_v61  ;;  %v788_v16 = vmul.f32 %v787_v63, %v1369_v15 }
 0x249   : > { %v860_v50 = vmul.f32 %v856_v19, %v688_v6  ;;  %v826_v47 = vmul.f32 %v825_v8, %v1392_v48  ;;  %vm809_vm11 = vcmp.eq.f32.partialorder %v808_v2, 8.507059e+37 }
 0x24a   : > { %v767_v43 = vsel %vm766_vm6, %v1048_v13, %v763_v55  ;;  %v837_v51 = vmul.f32 %v836_v57, %v1392_v48  ;;  %v690_v48 = vmul.f32 0.5, %v1364_v11  ;;  %v1053_v11 = vld [vmem:[%s1433_s2] sm:$0xff] }
 0x24b   : > { %898 = vmatmul.f32.vlgmr.msra.gmra.mxu3 %v860_v50  ;;  %v772_v46 = vsel %vm769_vm7, %v771_v40, %v767_v43  ;;  %v827_v13 = vadd.f32 1.1283791, %v826_v47  ;;  %v881_v1 = vperm.slane %v1053_v11, 3 }
 0x24c   : > { %v773_v52 = vmul.f32 %v772_v46, %v748_v41  ;;  %v838_v54 = vadd.f32 1.0, %v837_v51  ;;  %v1050_v56 = vpop.eup %1049 }
 0x24d   : > { %v800_v53 = vmul.f32 %v1050_v56, %v798_v26  ;;  %vm805_vm8 = vweird.f32 %v1050_v56  ;;  %v828_v15 = vmul.f32 %v827_v13, %v1385_v30 }
 0x24e   : > { %v1003_v37 = vclamps-f32 %v773_v52, 1.0  ;;  %1051 = vrcp.f32 %v838_v54  ;;  %vm806_vm10 = vmor %vm804_vm9, %vm805_vm8  ;;  %v850_v10 = vand.u32 2147483648, %v838_v54  ;;  %v848_v14 = vand.u32 2147483647, %v838_v54 }
 0x24f   : > { %v801_v60 = vsub.f32 1.0, %v800_v53  ;;  %vm844_vm13 = vweird.f32 %v838_v54 }
 0x250   : > { %v857_v58 = vadd.f32 1.0, %v1003_v37  ;;  %v851_v62 = vor.u32 1.1754944e-38, %v850_v10  ;;  %vm849_vm15 = vcmp.eq.f32.partialorder %v848_v14, 8.507059e+37 }
 0x251   : > { %v802_v0 = vmul.f32 %v1050_v56, %v801_v60 }
 0x252   : > { %v861_v59 = vmul.f32 %v857_v58, %v689_v42 }
 0x253   : > { %v803_v44 = vadd.f32 %v1050_v56, %v802_v0 }
 0x254   : > { %901 = vmatmul.f32.gmra.mxu3 %v861_v59  ;;  %v1052_v38 = vpop.eup %1051 }
 0x255   : > { %v840_v21 = vmul.f32 %v1052_v38, %v838_v54  ;;  %v807_v4 = vsel %vm806_vm10, %v1050_v56, %v803_v44  ;;  %vm845_vm12 = vweird.f32 %v1052_v38 }
 0x256   : > { %v812_v5 = vsel %vm809_vm11, %v811_v3, %v807_v4  ;;  %vm846_vm14 = vmor %vm844_vm13, %vm845_vm12 }
 0x257   : > { %v841_v7 = vsub.f32 1.0, %v840_v21  ;;  %v813_v9 = vmul.f32 %v812_v5, %v788_v16 }
 0x259   : > { %v842_v32 = vmul.f32 %v1052_v38, %v841_v7  ;;  %v1004_v12 = vclamps-f32 %v813_v9, 1.0 }
 0x25b   : > { %v843_v39 = vadd.f32 %v1052_v38, %v842_v32  ;;  %v858_v35 = vadd.f32 1.0, %v1004_v12 }
 0x25d   : > { %v847_v17 = vsel %vm846_vm14, %v1052_v38, %v843_v39  ;;  %v862_v6 = vmul.f32 %v858_v35, %v690_v48 }
 0x25e   : > { %v852_v18 = vsel %vm849_vm15, %v851_v62, %v847_v17 }
 0x25f   : > { %v853_v19 = vmul.f32 %v852_v18, %v828_v15  ;;  %904 = vmatmul.f32.gmra.mxu3 %v862_v6 }
 0x261   : > { %v1005_v23 = vclamps-f32 %v853_v19, 1.0 }
 0x263   : > { %v859_v25 = vadd.f32 1.0, %v1005_v23 }
 0x265   : > { %v863_v20 = vmul.f32 %v859_v25, %v691_v24 }
 0x267   : > { %907 = vmatmul.f32.gmra.mxu3 %v863_v20 }
 0x2ce   : > { %v899_v30 = vpop.f32.mrf.mxu3 }
 0x2cf   : > { %v900_v50 = vadd.f32 %v899_v30, %v881_v1 }
 0x2d1   : > { %911 = vst [vmem:[%s189_s5] sm:$0xff] %v900_v50 }
 0x2d7   : > { %v902_v31 = vpop.f32.mrf.mxu3 }
 0x2d8   : > { %v903_v34 = vadd.f32 %v902_v31, %v881_v1 }
 0x2da   : > { %912 = vst [vmem:[%s189_s5 + $0x8] sm:$0xff] %v903_v34 }
 0x2e2   : > { %v905_v27 = vpop.f32.mrf.mxu3 }
 0x2e3   : > { %v906_v33 = vadd.f32 %v905_v27, %v881_v1 }
 0x2e5   : > { %913 = vst [vmem:[%s189_s5 + $0x10] sm:$0xff] %v906_v33 }
 0x2ea   : > { %v908_v26 = vpop.f32.mrf.mxu3 }
 0x2eb   : > { %v909_v22 = vadd.f32 %v908_v26, %v881_v1 }
 0x2ed   : > { %914 = vst [vmem:[%s189_s5 + $0x18] sm:$0xff] %v909_v22 }
 0x2ee PF: > { %s14_s12 = sadd.s32 1, %s1094_s12  }
 0x2ef   : > { %p11_p7 = scmp.ge.s32.totalorder %s14_s12, 4  }
 0x2f1   :  { %13 = sbr.rel (!%p11_p7) target bundleno = 1 (0x1), region = 70 }
 0x2f6   :  { %937 = vsyncpa [#allocation3], 1 }
 0x2f7   :  { %939 = vsyncpa [#allocation3 + $0x1], 1 }

</bundles_post_ra>
